<compile_context>
chip_gen: v7x
topology: tpu7x:2x2x1
jax: 0.10.0
libtpu: 0.0.40
codegen_flags: <defaults>
</compile_context>

<pallas_src>
import functools

import jax
import jax.numpy as jnp
from jax.experimental import pallas as pl
from jax.experimental.pallas import tpu as pltpu


def _round_up(x, m):
    return (x + m - 1) // m * m


def _global_max_pool_rows_kernel(x_ref, o_ref, acc_ref, *, n_lane_chunks):
    """Running max over the L (lane) axis for one (TM, TL) tile.

    x_ref:   (TM, TL)  input tile, TL == n_lane_chunks * 128
    o_ref:   (TM, 1)   per-row max, written only on the last L step
    acc_ref: (TM, 128) f32 running-max accumulator, resident across the L axis
    """
    j = pl.program_id(1)

    @pl.when(j == 0)
    def _init():
        acc_ref[...] = jnp.full(acc_ref.shape, -jnp.inf, dtype=acc_ref.dtype)

    x = x_ref[...].astype(jnp.float32)          # (TM, TL)
    m = acc_ref[...]                            # (TM, 128)
    # Elementwise (VPU) fold of TL lanes into 128 lanes: stays off the XLU and
    # hides under the DMA/HBM stream.
    for c in range(n_lane_chunks):
        m = jnp.maximum(m, x[:, c * 128:(c + 1) * 128])
    acc_ref[...] = m

    @pl.when(j == pl.num_programs(1) - 1)
    def _finalize():
        # Single cross-lane reduction per row tile.
        o_ref[...] = jnp.max(acc_ref[...], axis=-1, keepdims=True).astype(o_ref.dtype)


def global_max_pool1d(x, *, tile_rows=256, tile_len=2048, force_pallas=False):
    """Equivalent of F.max_pool1d(x, kernel_size=x.shape[2]) for x of shape (N, C, L)."""
    N, C, L = x.shape
    M = N * C

    # Tiny problems: invocation + per-grid-step overhead swamps the reduction;
    # let XLA fuse it for free.
    if not force_pallas and M * L <= 16384:
        return jnp.max(x, axis=-1, keepdims=True)

    if not jnp.issubdtype(x.dtype, jnp.floating):
        # TODO(synk): integer dtypes would need an iinfo-min pad value; PyTorch's
        # max_pool1d is float-only, so only the float path goes through Pallas.
        return jnp.max(x, axis=-1, keepdims=True)

    # Tile sizes: rows (sublanes) multiple of 8, length (lanes) multiple of 128.
    tm = min(tile_rows, _round_up(M, 8))
    tl = min(tile_len, _round_up(L, 128))
    m_pad = _round_up(M, tm)
    l_pad = _round_up(L, tl)

    xf = x.reshape(M, L)
    if m_pad != M or l_pad != L:
        # Pad the reduction tail (and extra rows) with -inf so max is unaffected.
        xf = jnp.pad(xf, ((0, m_pad - M), (0, l_pad - L)),
                     constant_values=-jnp.inf)

    grid = (m_pad // tm, l_pad // tl)
    itemsize = xf.dtype.itemsize

    kernel = functools.partial(_global_max_pool_rows_kernel,
                               n_lane_chunks=tl // 128)

    out = pl.pallas_call(
        kernel,
        out_shape=jax.ShapeDtypeStruct((m_pad, 1), x.dtype),
        grid_spec=pltpu.PrefetchScalarGridSpec(
            num_scalar_prefetch=0,
            grid=grid,
            in_specs=[pl.BlockSpec((tm, tl), lambda i, j: (i, j))],
            out_specs=pl.BlockSpec((tm, 1), lambda i, j: (i, 0)),
            scratch_shapes=[pltpu.VMEM((tm, 128), jnp.float32)],
        ),
        compiler_params=pltpu.CompilerParams(
            dimension_semantics=("parallel", "arbitrary"),
            # 2 x input tile + acc + out is ~4-5 MiB; 32 MiB leaves headroom on
            # every generation (v7x physical VMEM is 64 MiB per TensorCore).
            vmem_limit_bytes=32 * 1024 * 1024,
        ),
        cost_estimate=pl.CostEstimate(
            flops=m_pad * l_pad,
            transcendentals=0,
            bytes_accessed=m_pad * l_pad * itemsize + m_pad * itemsize,
        ),
    )(xf)

    return out[:M, :].reshape(N, C, 1)


if __name__ == "__main__":
    key = jax.random.PRNGKey(0)
    k1, k2 = jax.random.split(key)

    # Shapes consistent with the module: (N, C, L) = (2, 4, 16).
    N, C, L = 2, 4, 16
    x = jax.random.normal(k1, (N, C, L), dtype=jnp.float32)
    ref = jnp.max(x, axis=-1, keepdims=True)

    # 1) Default wrapper path (tiny input -> XLA fast path).
    out_fast = jax.block_until_ready(global_max_pool1d(x))
    assert out_fast.shape == (N, C, 1), out_fast.shape
    assert jnp.allclose(out_fast, ref), "fast-path mismatch vs reference"

    # 2) Force the Pallas kernel on the same small input (exercises the TPU kernel).
    out_pallas = jax.block_until_ready(global_max_pool1d(x, force_pallas=True))
    assert out_pallas.shape == (N, C, 1), out_pallas.shape
    assert jnp.allclose(out_pallas, ref), "pallas mismatch vs reference"

    # 3) Small non-aligned shape (exercises row + length padding), mostly negative
    #    values to validate the -inf padding.
    x2 = jax.random.normal(k2, (3, 5, 130), dtype=jnp.float32) - 2.0
    out2 = jax.block_until_ready(global_max_pool1d(x2, force_pallas=True))
    ref2 = jnp.max(x2, axis=-1, keepdims=True)
    assert out2.shape == (3, 5, 1), out2.shape
    assert jnp.allclose(out2, ref2), "pallas (padded) mismatch vs reference"

    print("KERNEL_OK")
</pallas_src>

<mosaic_0001>
module attributes {stable_mosaic.version = 11 : i64} {
  func.func @_global_max_pool_rows_kernel(%arg0: i32, %arg1: i32, %arg2: memref<8x128xf32, #tpu.memory_space<vmem>>, %arg3: memref<8x1xf32, #tpu.memory_space<vmem>>, %arg4: memref<8x128xf32, #tpu.memory_space<vmem>>) attributes {dimension_semantics = [#tpu.dimension_semantics<parallel>, #tpu.dimension_semantics<arbitrary>], iteration_bounds = array<i64: 1, 1>, scalar_prefetch = 0 : i64, scratch_operands = 1 : i64, tpu.core_type = #tpu.core_type<tc>, window_params = [{transform_indices = @transform_0, window_bounds = array<i64: 8, 128>}, {transform_indices = @transform_1, window_bounds = array<i64: 8, 1>}]} {
    %c0_i32 = arith.constant 0 : i32
    %0 = arith.cmpi eq, %arg1, %c0_i32 : i32
    %1 = arith.extui %0 : i1 to i32
    %c0_i32_0 = arith.constant 0 : i32
    %2 = arith.cmpi ne, %1, %c0_i32_0 : i32
    scf.if %2 {
      %cst = arith.constant 0xFF800000 : f32
      %10 = vector.broadcast %cst : f32 to vector<8x128xf32>
      %c0_8 = arith.constant 0 : index
      %c0_9 = arith.constant 0 : index
      %11 = vector.load %arg4[%c0_8, %c0_9] : memref<8x128xf32, #tpu.memory_space<vmem>>, vector<8x128xf32>
      tpu.vector_store %arg4[%c0_8, %c0_9], %10 {strides = array<i32>} : memref<8x128xf32, #tpu.memory_space<vmem>>, vector<8x128xf32>,
    } else {
    }
    %c0 = arith.constant 0 : index
    %c0_1 = arith.constant 0 : index
    %3 = vector.load %arg2[%c0, %c0_1] : memref<8x128xf32, #tpu.memory_space<vmem>>, vector<8x128xf32>
    %c0_2 = arith.constant 0 : index
    %c0_3 = arith.constant 0 : index
    %4 = vector.load %arg4[%c0_2, %c0_3] : memref<8x128xf32, #tpu.memory_space<vmem>>, vector<8x128xf32>
    %5 = arith.maximumf %4, %3 : vector<8x128xf32>
    %c0_4 = arith.constant 0 : index
    %c0_5 = arith.constant 0 : index
    %6 = vector.load %arg4[%c0_4, %c0_5] : memref<8x128xf32, #tpu.memory_space<vmem>>, vector<8x128xf32>
    tpu.vector_store %arg4[%c0_4, %c0_5], %5 {strides = array<i32>} : memref<8x128xf32, #tpu.memory_space<vmem>>, vector<8x128xf32>,
    %c0_i32_6 = arith.constant 0 : i32
    %7 = arith.cmpi eq, %arg1, %c0_i32_6 : i32
    %8 = arith.extui %7 : i1 to i32
    %c0_i32_7 = arith.constant 0 : i32
    %9 = arith.cmpi ne, %8, %c0_i32_7 : i32
    scf.if %9 {
      %c0_8 = arith.constant 0 : index
      %c0_9 = arith.constant 0 : index
      %10 = vector.load %arg4[%c0_8, %c0_9] : memref<8x128xf32, #tpu.memory_space<vmem>>, vector<8x128xf32>
      %cst = arith.constant dense<0xFF800000> : vector<8xf32>
      %11 = vector.multi_reduction <maximumf>, %10, %cst [1] : vector<8x128xf32> to vector<8xf32>
      %12 = vector.shape_cast %11 : vector<8xf32> to vector<8x1xf32>
      %c0_10 = arith.constant 0 : index
      %c0_11 = arith.constant 0 : index
      %13 = vector.load %arg3[%c0_10, %c0_11] : memref<8x1xf32, #tpu.memory_space<vmem>>, vector<8x1xf32>
      tpu.vector_store %arg3[%c0_10, %c0_11], %12 {strides = array<i32>} : memref<8x1xf32, #tpu.memory_space<vmem>>, vector<8x1xf32>,
    } else {
    }
    return
  }
  func.func @transform_0(%arg0: i32, %arg1: i32) -> (i32, i32) {
    %c0_i32 = arith.constant 0 : i32
    return %arg0, %arg1 : i32, i32
  }
  func.func @transform_1(%arg0: i32, %arg1: i32) -> (i32, i32) {
    %c0_i32 = arith.constant 0 : i32
    %c0_i32_0 = arith.constant 0 : i32
    return %arg0, %c0_i32 : i32, i32
  }
}

</mosaic_0001>

<bundles_post_ra>
// kernel: tpu_custom_call.1
= control target key start
LH: loop header
LB: loop body
LE: loop exit
PB: predicated region body
PF: predicated region fallthrough
CT: control target
= control target key end

     0   :  { %6 = vsyncpa [#allocation4], 0  ;;  %s67_s6 = smov [#allocation3]   ;;  %s93_s0 = inlined_call_operand.hbm [shape: f32[8,128], index: 0, kind: input, shape index: {}]   ;;  %s94_s1 = inlined_call_operand.vmem [shape: f32[8,1], index: 1, kind: output, shape index: {}]  }
   0x1   :  { %s13_s7 = sshll.u32 %s67_s6, 4  ;;  %s43_s10 = scalar_lea.hbm %s93_s0, 128  ;;  %s14_s7 = int_to_ptr.vmem [resolvable:$true] %s13_s7 }
   0x2   :  { %p44_p0 = scmp.ne.s32.totalorder %s93_s0, %s43_s10  ;;  %p47_p1 = scmp.lt.u32.totalorder %s43_s10, %s93_s0 }
   0x4   :  { %p49_p2 = pnand %p47_p1, %p44_p0 }
   0x6   :  { %52 = shalt.err (!%p49_p2)
}
   0x7   :  { %s53_s15 = scalar_lea.vmem %s14_s7, 128  ;;  %p58_p4 = scmp.lt.s32.totalorder %s14_s7, %s14_s7 }
   0x8   :  { %p54_p3 = scmp.ne.s32.totalorder %s14_s7, %s53_s15  ;;  %p59_p5 = scmp.lt.s32.totalorder %s53_s15, %s53_s15 }
   0xa   :  { %p60_p6 = por %p59_p5, %p58_p4 }
   0xc   :  { %p61_p7 = pnand %p60_p6, %p54_p3 }
   0xe   :  { %64 = shalt.err (!%p61_p7)
}
   0xf   :  { %16 = dma.hbm_to_vmem [thread:$0]  %s93_s0, 128, %s14_s7, [#allocation4]  }
  0x10   :  { %65 = dma.done.wait [#allocation4], 128  }
  0x11   :  { %66 = vsyncadd [#allocation4], 4294967168  ;;  %v25_v0 = vld [vmem:[#allocation3] sm:$0xff]  ;;  %vm35_vm0 = vcmask 7168  }
  0x12   :  { %33 = vmax.xlane.f32.xlu0 %v25_v0 }
  0x9f   :  { %v34_v1 = vpop.xlane.xlu0 %33 }
  0xa0   :  { %36 = vst.msk [vmem:[%s94_s1] sm:$0xff] %vm35_vm0, %v34_v1 }
  0xa1   :  { %41 = vsyncpa [#allocation4], 1 }

</bundles_post_ra>
